<compile_context>
chip_gen: v5e
topology: v5e:2x2
jax: 0.10.0
libtpu: 0.0.40
codegen_flags: <defaults>
</compile_context>

<pallas_src>
import jax
import jax.numpy as jnp
from jax.experimental import pallas as pl
from jax.experimental.pallas import tpu as pltpu


def _round_up(x: int, m: int) -> int:
    return (x + m - 1) // m * m


def _nn_kernel(x_ref, u_ref, w1_ref, b1_ref, w2_ref, b2_ref, o_ref):
    x = x_ref[...]                                    # [TN, F] float32

    # --- Dropout(p=0.5, training=True): keep w.p. 0.5, scale kept by 2 ---
    keep = u_ref[...] < jnp.float32(0.5)
    h = jnp.where(keep, x + x, jnp.float32(0.0)).astype(jnp.bfloat16)

    # --- linear1: h @ W1 + b1 (bf16 inputs, f32 MXU accumulation) ---
    h1 = jnp.dot(h, w1_ref[...], preferred_element_type=jnp.float32)
    h1 = h1 + b1_ref[...]                             # b1 is [1, Hp], broadcasts

    # --- linear2: h1 @ W2 + b2 ---
    out = jnp.dot(h1.astype(jnp.bfloat16), w2_ref[...],
                  preferred_element_type=jnp.float32)
    out = out + b2_ref[...]                           # b2 is [1, Dp]

    o_ref[...] = out.astype(o_ref.dtype)


def nn_forward(x, w1, b1, w2, b2, key, *, tile_n=128):
    """x: [N, F]; w1: [F, H]; b1: [H]; w2: [H, D]; b2: [D]; key: PRNG key.

    Weights are stored as [in, out] (transposed w.r.t. nn.Linear.weight) so
    the kernel computes x @ W + b directly on the MXU.
    """
    N, F = x.shape
    H = w1.shape[1]
    D = w2.shape[1]

    # Lane-dense padding of hidden / output feature dims; batch tile sizing.
    Hp = _round_up(H, 128)
    Dp = _round_up(D, 128)
    TN = min(tile_n, _round_up(N, 8))
    Np = _round_up(N, TN)

    xp = jnp.pad(x.astype(jnp.float32), ((0, Np - N), (0, 0)))
    # Dropout randomness generated host-side (portable: TPU + interpret mode).
    u = jax.random.uniform(key, (Np, F), dtype=jnp.float32)

    w1p = jnp.pad(w1, ((0, 0), (0, Hp - H))).astype(jnp.bfloat16)
    b1p = jnp.pad(b1, (0, Hp - H)).reshape(1, Hp).astype(jnp.float32)
    w2p = jnp.pad(w2, ((0, Hp - H), (0, Dp - D))).astype(jnp.bfloat16)
    b2p = jnp.pad(b2, (0, Dp - D)).reshape(1, Dp).astype(jnp.float32)

    grid = (Np // TN,)

    flops = 2 * Np * (F * Hp + Hp * Dp)
    bytes_accessed = (
        (xp.size + u.size) * 4            # f32 activations + randoms
        + (w1p.size + w2p.size) * 2       # bf16 weights
        + (b1p.size + b2p.size) * 4       # f32 biases
        + Np * Dp * 4                     # f32 output
    )

    out_p = pl.pallas_call(
        _nn_kernel,
        out_shape=jax.ShapeDtypeStruct((Np, Dp), jnp.float32),
        grid=grid,
        in_specs=[
            pl.BlockSpec((TN, F), lambda i: (i, 0)),    # x        (batch-tiled)
            pl.BlockSpec((TN, F), lambda i: (i, 0)),    # dropout randoms
            pl.BlockSpec((F, Hp), lambda i: (0, 0)),    # W1 (resident)
            pl.BlockSpec((1, Hp), lambda i: (0, 0)),    # b1 (resident)
            pl.BlockSpec((Hp, Dp), lambda i: (0, 0)),   # W2 (resident)
            pl.BlockSpec((1, Dp), lambda i: (0, 0)),    # b2 (resident)
        ],
        out_specs=pl.BlockSpec((TN, Dp), lambda i: (i, 0)),
        compiler_params=pltpu.CompilerParams(
            dimension_semantics=("parallel",),
        ),
        cost_estimate=pl.CostEstimate(
            flops=flops, transcendentals=0, bytes_accessed=bytes_accessed),
    )(xp, u, w1p, b1p, w2p, b2p)

    # Strip batch / lane padding.
    return out_p[:N, :D]


def to_prob(h, idx):
    # Mirrors NN.to_prob: sigmoid of one row of the stored forward output.
    return jax.nn.sigmoid(h[idx])


if __name__ == "__main__":
    # Small shapes consistent with the module: batch=8, in_features=16,
    # hidden_dim=32, out_dim=8.
    N, F, H, D = 8, 16, 32, 8

    key = jax.random.PRNGKey(0)
    kx, k1, k2, k3, k4, kdrop = jax.random.split(key, 6)

    x = jax.random.normal(kx, (N, F), dtype=jnp.float32)

    # Deterministic parameter init (PyTorch-style uniform(-1/sqrt(fan_in), ...)).
    lim1 = 1.0 / jnp.sqrt(jnp.float32(F))
    lim2 = 1.0 / jnp.sqrt(jnp.float32(H))
    w1 = jax.random.uniform(k1, (F, H), jnp.float32, -lim1, lim1)
    b1 = jax.random.uniform(k2, (H,), jnp.float32, -lim1, lim1)
    w2 = jax.random.uniform(k3, (H, D), jnp.float32, -lim2, lim2)
    b2 = jax.random.uniform(k4, (D,), jnp.float32, -lim2, lim2)

    out = nn_forward(x, w1, b1, w2, b2, kdrop)
    out = jax.block_until_ready(out)

    assert out.shape == (N, D) and out.dtype == jnp.float32
    assert bool(jnp.all(jnp.isfinite(out)))

    # Exercise to_prob on row 0 (glue op, plain JAX).
    p = jax.block_until_ready(to_prob(out, 0))
    assert p.shape == (D,)

    print("KERNEL_OK")
</pallas_src>

<mosaic_0001>
module attributes {stable_mosaic.version = 11 : i64} {
  func.func @_nn_kernel(%arg0: i32, %arg1: memref<8x16xf32, #tpu.memory_space<vmem>>, %arg2: memref<8x16xf32, #tpu.memory_space<vmem>>, %arg3: memref<16x128xbf16, #tpu.memory_space<vmem>>, %arg4: memref<1x128xf32, #tpu.memory_space<vmem>>, %arg5: memref<128x128xbf16, #tpu.memory_space<vmem>>, %arg6: memref<1x128xf32, #tpu.memory_space<vmem>>, %arg7: memref<8x128xf32, #tpu.memory_space<vmem>>) attributes {dimension_semantics = [#tpu.dimension_semantics<parallel>], iteration_bounds = array<i64: 1>, scalar_prefetch = 0 : i64, scratch_operands = 0 : i64, tpu.core_type = #tpu.core_type<tc>, window_params = [{transform_indices = @transform_0, window_bounds = array<i64: 8, 16>}, {transform_indices = @transform_1, window_bounds = array<i64: 8, 16>}, {pipeline_mode = #tpu.pipeline_mode<synchronous>, transform_indices = @transform_2, window_bounds = array<i64: 16, 128>}, {pipeline_mode = #tpu.pipeline_mode<synchronous>, transform_indices = @transform_3, window_bounds = array<i64: 1, 128>}, {pipeline_mode = #tpu.pipeline_mode<synchronous>, transform_indices = @transform_4, window_bounds = array<i64: 128, 128>}, {pipeline_mode = #tpu.pipeline_mode<synchronous>, transform_indices = @transform_5, window_bounds = array<i64: 1, 128>}, {transform_indices = @transform_6, window_bounds = array<i64: 8, 128>}]} {
    %c0 = arith.constant 0 : index
    %c0_0 = arith.constant 0 : index
    %0 = vector.load %arg1[%c0, %c0_0] : memref<8x16xf32, #tpu.memory_space<vmem>>, vector<8x16xf32>
    %c0_1 = arith.constant 0 : index
    %c0_2 = arith.constant 0 : index
    %1 = vector.load %arg2[%c0_1, %c0_2] : memref<8x16xf32, #tpu.memory_space<vmem>>, vector<8x16xf32>
    %cst = arith.constant 5.000000e-01 : f32
    %2 = vector.broadcast %cst : f32 to vector<8x16xf32>
    %3 = arith.cmpf olt, %1, %2 : vector<8x16xf32>
    %4 = arith.addf %0, %0 : vector<8x16xf32>
    %cst_3 = arith.constant 0.000000e+00 : f32
    %5 = vector.broadcast %cst_3 : f32 to vector<8x16xf32>
    %6 = arith.select %3, %4, %5 : vector<8x16xi1>, vector<8x16xf32>
    %7 = arith.truncf %6 : vector<8x16xf32> to vector<8x16xbf16>
    %c0_4 = arith.constant 0 : index
    %c0_5 = arith.constant 0 : index
    %8 = vector.load %arg3[%c0_4, %c0_5] : memref<16x128xbf16, #tpu.memory_space<vmem>>, vector<16x128xbf16>
    %cst_6 = arith.constant dense<0.000000e+00> : vector<8x128xf32>
    %9 = tpu.matmul %7, %8, %cst_6 {dimension_numbers = #tpu.dot_dimension_numbers<[1], [0], [0], [1], [0, 0, 1, 1], [], []>} : vector<8x16xbf16>, vector<16x128xbf16>, vector<8x128xf32> -> vector<8x128xf32>
    %c0_7 = arith.constant 0 : index
    %c0_8 = arith.constant 0 : index
    %10 = vector.load %arg4[%c0_7, %c0_8] : memref<1x128xf32, #tpu.memory_space<vmem>>, vector<1x128xf32>
    %11 = vector.broadcast %10 : vector<1x128xf32> to vector<8x128xf32>
    %12 = arith.addf %9, %11 : vector<8x128xf32>
    %13 = arith.truncf %12 : vector<8x128xf32> to vector<8x128xbf16>
    %c0_9 = arith.constant 0 : index
    %c0_10 = arith.constant 0 : index
    %14 = vector.load %arg5[%c0_9, %c0_10] : memref<128x128xbf16, #tpu.memory_space<vmem>>, vector<128x128xbf16>
    %cst_11 = arith.constant dense<0.000000e+00> : vector<8x128xf32>
    %15 = tpu.matmul %13, %14, %cst_11 {dimension_numbers = #tpu.dot_dimension_numbers<[1], [0], [0], [1], [0, 0, 1, 1], [], []>} : vector<8x128xbf16>, vector<128x128xbf16>, vector<8x128xf32> -> vector<8x128xf32>
    %c0_12 = arith.constant 0 : index
    %c0_13 = arith.constant 0 : index
    %16 = vector.load %arg6[%c0_12, %c0_13] : memref<1x128xf32, #tpu.memory_space<vmem>>, vector<1x128xf32>
    %17 = vector.broadcast %16 : vector<1x128xf32> to vector<8x128xf32>
    %18 = arith.addf %15, %17 : vector<8x128xf32>
    %c0_14 = arith.constant 0 : index
    %c0_15 = arith.constant 0 : index
    %19 = vector.load %arg7[%c0_14, %c0_15] : memref<8x128xf32, #tpu.memory_space<vmem>>, vector<8x128xf32>
    tpu.vector_store %arg7[%c0_14, %c0_15], %18 {strides = array<i32>} : memref<8x128xf32, #tpu.memory_space<vmem>>, vector<8x128xf32>,
    return
  }
  func.func @transform_0(%arg0: i32) -> (i32, i32) {
    %c0_i32 = arith.constant 0 : i32
    %c0_i32_0 = arith.constant 0 : i32
    return %arg0, %c0_i32 : i32, i32
  }
  func.func @transform_1(%arg0: i32) -> (i32, i32) {
    %c0_i32 = arith.constant 0 : i32
    %c0_i32_0 = arith.constant 0 : i32
    return %arg0, %c0_i32 : i32, i32
  }
  func.func @transform_2(%arg0: i32) -> (i32, i32) {
    %c0_i32 = arith.constant 0 : i32
    %c0_i32_0 = arith.constant 0 : i32
    %c0_i32_1 = arith.constant 0 : i32
    return %c0_i32, %c0_i32_0 : i32, i32
  }
  func.func @transform_3(%arg0: i32) -> (i32, i32) {
    %c0_i32 = arith.constant 0 : i32
    %c0_i32_0 = arith.constant 0 : i32
    %c0_i32_1 = arith.constant 0 : i32
    return %c0_i32, %c0_i32_0 : i32, i32
  }
  func.func @transform_4(%arg0: i32) -> (i32, i32) {
    %c0_i32 = arith.constant 0 : i32
    %c0_i32_0 = arith.constant 0 : i32
    %c0_i32_1 = arith.constant 0 : i32
    return %c0_i32, %c0_i32_0 : i32, i32
  }
  func.func @transform_5(%arg0: i32) -> (i32, i32) {
    %c0_i32 = arith.constant 0 : i32
    %c0_i32_0 = arith.constant 0 : i32
    %c0_i32_1 = arith.constant 0 : i32
    return %c0_i32, %c0_i32_0 : i32, i32
  }
  func.func @transform_6(%arg0: i32) -> (i32, i32) {
    %c0_i32 = arith.constant 0 : i32
    %c0_i32_0 = arith.constant 0 : i32
    return %arg0, %c0_i32 : i32, i32
  }
}

</mosaic_0001>

<bundles_post_ra>
// kernel: tpu_custom_call.1
= control target key start
LH: loop header
LB: loop body
LE: loop exit
PB: predicated region body
PF: predicated region fallthrough
CT: control target
= control target key end

     0   :  { %11 = vsyncpa [#allocation3], 0  ;;  %s467_s0 = inlined_call_operand.hbm [shape: f32[8,16], index: 0, kind: input, shape index: {}]   ;;  %s468_s1 = inlined_call_operand.hbm [shape: f32[8,16], index: 1, kind: input, shape index: {}]   ;;  %s469_s2 = inlined_call_operand.hbm [shape: bf16[16,128], index: 2, kind: input, shape index: {}]   ;;  %s470_s3 = inlined_call_operand.vmem [shape: f32[1,128], index: 3, kind: input, shape index: {}]   ;;  %s471_s4 = inlined_call_operand.hbm [shape: bf16[128,128], index: 4, kind: input, shape index: {}]   ;;  %s472_s5 = inlined_call_operand.vmem [shape: f32[1,128], index: 5, kind: input, shape index: {}]   ;;  %s473_s6 = inlined_call_operand.hbm [shape: f32[8,128], index: 6, kind: output, shape index: {}]  }
   0x1   :  { %12 = vsyncpa [#allocation6], 0 }
   0x2   :  { %13 = vsyncpa [#allocation9], 0  ;;  %s31_s23 = sshll.u32 %s468_s1, 4  ;;  %s32_s23 = int_to_ptr.hbm [resolvable:$true] %s31_s23 }
   0x3   :  { %14 = vsyncpa [#allocation4], 0  ;;  %s404_s24 = smov [#allocation5]   ;;  %s20_s28 = sshll.u32 %s467_s0, 4  ;;  %s21_s28 = int_to_ptr.hbm [resolvable:$true] %s20_s28 }
   0x4   :  { %s33_s25 = sshll.u32 %s404_s24, 4  ;;  %s405_s29 = smov [#allocation2]   ;;  %s34_s25 = int_to_ptr.vmem [resolvable:$true] %s33_s25 }
   0x5   :  { %36 = dma.hbm_to_vmem [thread:$0]  %s32_s23, 128, %s34_s25, [#allocation6]  }
   0x6   :  { %s22_s30 = sshll.u32 %s405_s29, 4  ;;  %s41_s9 = sshll.u32 %s469_s2, 4  ;;  %s23_s30 = int_to_ptr.vmem [resolvable:$true] %s22_s30  ;;  %s42_s9 = int_to_ptr.hbm [resolvable:$true] %s41_s9 }
   0x7   :  { %25 = dma.hbm_to_vmem [thread:$0]  %s21_s28, 128, %s23_s30, [#allocation3]  }
   0x8   :  { %s406_s1 = smov [#allocation7]   ;;  %s56_s13 = sshll.u32 %s471_s4, 4  ;;  %s57_s13 = int_to_ptr.hbm [resolvable:$true] %s56_s13 }
   0x9   :  { %s43_s10 = sshll.u32 %s406_s1, 4  ;;  %s407_s14 = smov 64   ;;  %s44_s10 = int_to_ptr.vmem [resolvable:$true] %s43_s10 }
   0xa   :  { %s408_s0 = smov 4   ;;  %s409_s15 = smov [#allocation8]  }
   0xb   :  { %49 = dma.hbm_to_vmem [thread:$0]  %s42_s9, 128, %s44_s10, [#allocation6], %s407_s14, %s407_s14, %s408_s0  }
   0xc   :  { %s58_s16 = sshll.u32 %s409_s15, 4  ;;  %s59_s16 = int_to_ptr.vmem [resolvable:$true] %s58_s16 }
   0xd   :  { %64 = dma.hbm_to_vmem [thread:$0]  %s57_s13, 1024, %s59_s16, [#allocation9], %s407_s14, %s407_s14, %s408_s0  }
   0xe   :  { %396 = dma.done.wait [#allocation3], 128  }
   0xf   :  { %397 = vsyncadd [#allocation3], 4294967168 }
  0x10   :  { %398 = dma.done.wait [#allocation6], 256  }
  0x11   :  { %399 = vsyncadd [#allocation6], 4294967040 }
  0x12   :  { %400 = dma.done.wait [#allocation9], 1024  }
  0x13   :  { %401 = vsyncadd [#allocation9], 4294966272  ;;  %v258_v0 = vld [vmem:[#allocation7] sm:$0xff]  ;;  %v84_v1 = vld [vmem:[#allocation2] sm:$0xff]  ;;  %vm102_vm1 = vcmask 130048   ;;  %s410_s19 = smov [#allocation10]  }
  0x14   :  { %v85_v2 = vld [vmem:[#allocation5] sm:$0xff]  ;;  %v87_v3 = vadd.f32 %v84_v1, %v84_v1  ;;  %v266_v4 = vld [vmem:[#allocation8 + $0x38] sm:$0xff]  ;;  %113 = vmatpush.bf16.msra.mxu0 %v258_v0  ;;  %v264_v8 = vld [vmem:[#allocation8 + $0x28] sm:$0xff]  ;;  %s207_s20 = sshll.u32 %s410_s19, 4  ;;  %s209_s23 = sshll.u32 %s473_s6, 4  ;;  %s208_s20 = int_to_ptr.vmem [resolvable:$true] %s207_s20  ;;  %s210_s23 = int_to_ptr.hbm [resolvable:$true] %s209_s23 }
  0x15   :  { %vm86_vm0 = vcmp.lt.f32.partialorder %v85_v2, 0.5  ;;  %188 = vmatpush.bf16.msra.mxu1 %v266_v4  ;;  %v265_v6 = vld [vmem:[#allocation8 + $0x30] sm:$0xff]  ;;  %v263_v9 = vld [vmem:[#allocation8 + $0x20] sm:$0xff]  ;;  %v262_v10 = vld [vmem:[#allocation8 + $0x18] sm:$0xff] }
  0x16   :  { %v88_v5 = vsel %vm86_vm0, %v87_v3, 0.0  ;;  %v261_v11 = vld [vmem:[#allocation8 + $0x10] sm:$0xff]  ;;  %v260_v12 = vld [vmem:[#allocation8 + $0x8] sm:$0xff]  ;;  %v259_v13 = vld [vmem:[#allocation8] sm:$0xff] }
  0x17   :  { %v89_v7 = vpack.c.bf16 %v88_v5, %v88_v5  ;;  %v274_v14 = vld [vmem:[%s470_s3] ss:$0 sm:$0xff] }
  0x18   :  { %v275_v19 = vld [vmem:[%s472_s5] ss:$0 sm:$0xff] }
  0x19   :  { %225 = vmatmul.msk.bf16.vlgmr.msra.gmra.mxu0 %vm102_vm1, %v89_v7  ;;  %189 = vmatpush.bf16.msra.mxu1 %v265_v6 }
  0x1d   :  { %190 = vmatpush.bf16.msra.mxu1 %v264_v8 }
  0x21   :  { %191 = vmatpush.bf16.msra.mxu1 %v263_v9 }
  0x25   :  { %192 = vmatpush.bf16.msra.mxu1 %v262_v10 }
  0x29   :  { %193 = vmatpush.bf16.msra.mxu1 %v261_v11 }
  0x2d   :  { %194 = vmatpush.bf16.msra.mxu1 %v260_v12 }
  0x31   :  { %195 = vmatpush.bf16.msra.mxu1 %v259_v13 }
  0x96   :  { %v115_v15 = vpop.f32.mrf.mxu0 }
  0x97   :  { %v116_v16 = vadd.f32 %v274_v14, %v115_v15 }
  0x99   :  { %v119_v17 = vpack.c.bf16 %v116_v16, %v116_v16 }
  0x9b   :  { %196 = vmatmul.bf16.vlgmr.msra.gmra.mxu1 %v119_v17 }
  0x9e   :  { %v117_v18 = vpop.f32.mrf.mxu0 }
 0x118   :  { %v197_v20 = vpop.f32.mrf.mxu1 }
 0x119   :  { %v198_v21 = vadd.f32 %v275_v19, %v197_v20 }
 0x11b   :  { %201 = vst [vmem:[#allocation10] sm:$0xff] %v198_v21 }
 0x11c   :  { %212 = dma.vmem_to_hbm [thread:$0]  %s208_s20, 128, %s210_s23, [#allocation4]  }
 0x120   :  { %v199_v22 = vpop.f32.mrf.mxu1 }
 0x121   :  { %402 = dma.done.wait [#allocation4], 128  }
 0x122   :  { %403 = vsyncadd [#allocation4], 4294967168 }
 0x123   :  { %217 = vsyncpa [#allocation3], 1 }
 0x124   :  { %218 = vsyncpa [#allocation6], 1 }
 0x125   :  { %219 = vsyncpa [#allocation9], 1 }
 0x126   :  { %220 = vsyncpa [#allocation4], 1 }

</bundles_post_ra>
